<compile_context>
chip_gen: v5e
topology: v5e:2x2
jax: 0.10.0
libtpu: 0.0.40
codegen_flags: <defaults>
</compile_context>

<pallas_src>
import jax
import jax.numpy as jnp
from jax.experimental import pallas as pl
from jax.experimental.pallas import tpu as pltpu

LANE = 128
H_PAD = 128                       # 64-wide hidden layer padded to a full lane
VMEM_LIMIT_BYTES = 48 * 1024 * 1024


def _round_up(n, m):
    return ((n + m - 1) // m) * m


def _leaky_relu(v):
    # F.leaky_relu(v, 0.1) == max(v, 0.1*v) for finite inputs (2 VPU ops).
    return jnp.maximum(v, 0.1 * v)


def dqn_kernel(x_ref,
               w1_ref, b1_ref,
               w2_ref, b2_ref,
               w3_ref, b3_ref,
               w4_ref, b4_ref,
               out_ref):
    def layer(h_f32, w_ref, b_ref, act):
        # bf16 LHS x bf16 weights on the MXU, f32 accumulate; bias add and
        # activation in f32.
        acc = jnp.dot(h_f32.astype(jnp.bfloat16), w_ref[...],
                      preferred_element_type=jnp.float32) + b_ref[...]
        return _leaky_relu(acc) if act else acc

    h = layer(x_ref[...], w1_ref, b1_ref, True)
    h = layer(h, w2_ref, b2_ref, True)
    h = layer(h, w3_ref, b3_ref, True)
    q = layer(h, w4_ref, b4_ref, False)
    out_ref[...] = q.astype(out_ref.dtype)   # lane-dense (tm, 128-padded) store


def _auto_block_b(B):
    """Pick a batch tile. None => single untiled invocation."""
    if B <= 512:
        # Small batch: everything (weights + h1) fits comfortably in scoped
        # VMEM; a grid would only add per-step overhead and double-buffering.
        return None
    # Large batch: prefer big, 256-aligned tiles (fills the 256x256 MXU on
    # v6e/v7x; fewer serial grid steps on v5e) while keeping grid length >= 2
    # so the "parallel" axis can feed both v7x TensorCores.
    for tm in (1024, 512, 256):
        if B % tm == 0 and B // tm >= 2:
            return tm
    return 256  # non-divisible large batch: pad up to a multiple of 256


def dqn_forward(x, params, *, block_b="auto"):
    """x: [B, dim] float32.  params: dict from init_params (bf16 weights [in,out]).

    Returns [B, nbr_actions] float32.
    """
    B, dim = x.shape
    nbr_actions = params["nbr_actions"]
    a_pad = params["w_qsa"].shape[1]       # 128-padded action width

    if block_b == "auto":
        block_b = _auto_block_b(B)

    if block_b is not None:
        tm = int(block_b)
        B_run = _round_up(B, tm)
        x_run = x if B_run == B else jnp.pad(x, ((0, B_run - B), (0, 0)))
    else:
        tm = None
        B_run = B
        x_run = x

    args = (
        x_run,
        params["w_f1"], params["b_f1"],
        params["w_f2"], params["b_f2"],
        params["w_f"],  params["b_f"],
        params["w_qsa"], params["b_qsa"],
    )

    flops = 2 * B_run * (dim * 1024 + 1024 * 256 + 256 * H_PAD + H_PAD * a_pad)
    bytes_accessed = int(sum(a.size * a.dtype.itemsize for a in args)
                         + B_run * a_pad * 4)
    cost = pl.CostEstimate(flops=flops, transcendentals=0,
                           bytes_accessed=bytes_accessed)

    out_shape = jax.ShapeDtypeStruct((B_run, a_pad), jnp.float32)

    if tm is not None:
        # Batch-tiled path: weights get a constant block index so they stay
        # VMEM-resident across grid steps; the batch axis is "parallel"
        # (shards across both TensorCores on v7x).
        def w_spec(a):
            nd = a.ndim
            return pl.BlockSpec(a.shape, lambda i, _nd=nd: (0,) * _nd)

        in_specs = [pl.BlockSpec((tm, dim), lambda i: (i, 0))]
        in_specs += [w_spec(a) for a in args[1:]]

        q = pl.pallas_call(
            dqn_kernel,
            out_shape=out_shape,
            grid=(B_run // tm,),
            in_specs=in_specs,
            out_specs=pl.BlockSpec((tm, a_pad), lambda i: (i, 0)),
            compiler_params=pltpu.CompilerParams(
                dimension_semantics=("parallel",),
                vmem_limit_bytes=VMEM_LIMIT_BYTES),
            cost_estimate=cost,
        )(*args)
    else:
        # Small-batch path: no grid at all -> single invocation, no pointless
        # double buffering of the weights, no pipeline prologue/epilogue.
        vmem_spec = pl.BlockSpec(memory_space=pltpu.MemorySpace.VMEM)
        q = pl.pallas_call(
            dqn_kernel,
            out_shape=out_shape,
            in_specs=[vmem_spec] * len(args),
            out_specs=vmem_spec,
            compiler_params=pltpu.CompilerParams(
                vmem_limit_bytes=VMEM_LIMIT_BYTES),
            cost_estimate=cost,
        )(*args)

    return q[:B, :nbr_actions]


def init_params(key, dim, nbr_actions):
    """Mimics PyTorch nn.Linear default init (uniform +/- 1/sqrt(fan_in)).

    Weights stored transposed [in, out] in bfloat16; biases [1, out] in f32.
    The 'f' layer's 64-wide output (and qsa's 64-wide input) is zero-padded to
    128 lanes, and qsa's out-dim is zero-padded to a multiple of 128."""
    a_pad = _round_up(max(nbr_actions, 1), LANE)
    #        name   fan_in  fan_out  stored_in  stored_out
    layers = [("f1",  dim,   1024,    dim,      1024),
              ("f2",  1024,  256,     1024,     256),
              ("f",   256,   64,      256,      H_PAD),
              ("qsa", 64,    nbr_actions, H_PAD, a_pad)]
    params = {"nbr_actions": nbr_actions}
    for name, fan_in, fan_out, in_pad, out_pad in layers:
        key, kw, kb = jax.random.split(key, 3)
        bound = 1.0 / (fan_in ** 0.5)
        w = jax.random.uniform(kw, (fan_in, fan_out), jnp.float32, -bound, bound)
        b = jax.random.uniform(kb, (1, fan_out), jnp.float32, -bound, bound)
        w = jnp.pad(w, ((0, in_pad - fan_in), (0, out_pad - fan_out)))
        b = jnp.pad(b, ((0, 0), (0, out_pad - fan_out)))
        params[f"w_{name}"] = w.astype(jnp.bfloat16)
        params[f"b_{name}"] = b
    return params


def dqn_reference(x, params):
    """Pure-JAX reference using the same bf16 weights and bf16-cast LHS."""
    def layer(h, name, act):
        acc = jnp.dot(h.astype(jnp.bfloat16), params[f"w_{name}"],
                      preferred_element_type=jnp.float32) + params[f"b_{name}"]
        return _leaky_relu(acc) if act else acc

    h = layer(x, "f1", True)
    h = layer(h, "f2", True)
    h = layer(h, "f", True)
    q = layer(h, "qsa", False)
    return q[:, :params["nbr_actions"]]


if __name__ == "__main__":
    key = jax.random.PRNGKey(0)
    k_x, k_x2, k_p = jax.random.split(key, 3)

    B, dim, nbr_actions = 8, 3, 2          # useCNN['dim'] = 3, nbr_actions = 2
    params = init_params(k_p, dim, nbr_actions)

    # Small-batch (inference-style) path: single call, no grid.
    x = jax.random.normal(k_x, (B, dim), jnp.float32)
    q = jax.block_until_ready(dqn_forward(x, params))
    q_ref = dqn_reference(x, params)
    assert q.shape == (B, nbr_actions)
    assert jnp.allclose(q, q_ref, atol=1e-2, rtol=1e-2), "small-batch mismatch"

    # Batch-tiled (training/replay-style) path with a non-divisible batch:
    # exercises zero-padding to a tile multiple + parallel grid of length 2.
    B2 = 384
    x2 = jax.random.normal(k_x2, (B2, dim), jnp.float32)
    q2 = jax.block_until_ready(dqn_forward(x2, params, block_b=256))
    q2_ref = dqn_reference(x2, params)
    assert q2.shape == (B2, nbr_actions)
    assert jnp.allclose(q2, q2_ref, atol=1e-2, rtol=1e-2), "tiled-batch mismatch"

    print("KERNEL_OK")
</pallas_src>

<mosaic_0001>
module attributes {stable_mosaic.version = 11 : i64} {
  func.func @dqn_kernel(%arg0: memref<8x3xf32, #tpu.memory_space<vmem>>, %arg1: memref<3x1024xbf16, #tpu.memory_space<vmem>>, %arg2: memref<1x1024xf32, #tpu.memory_space<vmem>>, %arg3: memref<1024x256xbf16, #tpu.memory_space<vmem>>, %arg4: memref<1x256xf32, #tpu.memory_space<vmem>>, %arg5: memref<256x128xbf16, #tpu.memory_space<vmem>>, %arg6: memref<1x128xf32, #tpu.memory_space<vmem>>, %arg7: memref<128x128xbf16, #tpu.memory_space<vmem>>, %arg8: memref<1x128xf32, #tpu.memory_space<vmem>>, %arg9: memref<8x128xf32, #tpu.memory_space<vmem>>) attributes {dimension_semantics = [], scalar_prefetch = 0 : i64, scratch_operands = 0 : i64, tpu.core_type = #tpu.core_type<tc>} {
    %c0 = arith.constant 0 : index
    %c0_0 = arith.constant 0 : index
    %0 = vector.load %arg0[%c0, %c0_0] : memref<8x3xf32, #tpu.memory_space<vmem>>, vector<8x3xf32>
    %1 = arith.truncf %0 : vector<8x3xf32> to vector<8x3xbf16>
    %c0_1 = arith.constant 0 : index
    %c0_2 = arith.constant 0 : index
    %2 = vector.load %arg1[%c0_1, %c0_2] : memref<3x1024xbf16, #tpu.memory_space<vmem>>, vector<3x1024xbf16>
    %cst = arith.constant dense<0.000000e+00> : vector<8x1024xf32>
    %3 = tpu.matmul %1, %2, %cst {dimension_numbers = #tpu.dot_dimension_numbers<[1], [0], [0], [1], [0, 0, 1, 1], [], []>} : vector<8x3xbf16>, vector<3x1024xbf16>, vector<8x1024xf32> -> vector<8x1024xf32>
    %c0_3 = arith.constant 0 : index
    %c0_4 = arith.constant 0 : index
    %4 = vector.load %arg2[%c0_3, %c0_4] : memref<1x1024xf32, #tpu.memory_space<vmem>>, vector<1x1024xf32>
    %5 = vector.broadcast %4 : vector<1x1024xf32> to vector<8x1024xf32>
    %6 = arith.addf %3, %5 : vector<8x1024xf32>
    %cst_5 = arith.constant 1.000000e-01 : f32
    %7 = vector.broadcast %cst_5 : f32 to vector<8x1024xf32>
    %8 = arith.mulf %7, %6 : vector<8x1024xf32>
    %9 = arith.maximumf %6, %8 : vector<8x1024xf32>
    %10 = arith.truncf %9 : vector<8x1024xf32> to vector<8x1024xbf16>
    %c0_6 = arith.constant 0 : index
    %c0_7 = arith.constant 0 : index
    %11 = vector.load %arg3[%c0_6, %c0_7] : memref<1024x256xbf16, #tpu.memory_space<vmem>>, vector<1024x256xbf16>
    %cst_8 = arith.constant dense<0.000000e+00> : vector<8x256xf32>
    %12 = tpu.matmul %10, %11, %cst_8 {dimension_numbers = #tpu.dot_dimension_numbers<[1], [0], [0], [1], [0, 0, 1, 1], [], []>} : vector<8x1024xbf16>, vector<1024x256xbf16>, vector<8x256xf32> -> vector<8x256xf32>
    %c0_9 = arith.constant 0 : index
    %c0_10 = arith.constant 0 : index
    %13 = vector.load %arg4[%c0_9, %c0_10] : memref<1x256xf32, #tpu.memory_space<vmem>>, vector<1x256xf32>
    %14 = vector.broadcast %13 : vector<1x256xf32> to vector<8x256xf32>
    %15 = arith.addf %12, %14 : vector<8x256xf32>
    %cst_11 = arith.constant 1.000000e-01 : f32
    %16 = vector.broadcast %cst_11 : f32 to vector<8x256xf32>
    %17 = arith.mulf %16, %15 : vector<8x256xf32>
    %18 = arith.maximumf %15, %17 : vector<8x256xf32>
    %19 = arith.truncf %18 : vector<8x256xf32> to vector<8x256xbf16>
    %c0_12 = arith.constant 0 : index
    %c0_13 = arith.constant 0 : index
    %20 = vector.load %arg5[%c0_12, %c0_13] : memref<256x128xbf16, #tpu.memory_space<vmem>>, vector<256x128xbf16>
    %cst_14 = arith.constant dense<0.000000e+00> : vector<8x128xf32>
    %21 = tpu.matmul %19, %20, %cst_14 {dimension_numbers = #tpu.dot_dimension_numbers<[1], [0], [0], [1], [0, 0, 1, 1], [], []>} : vector<8x256xbf16>, vector<256x128xbf16>, vector<8x128xf32> -> vector<8x128xf32>
    %c0_15 = arith.constant 0 : index
    %c0_16 = arith.constant 0 : index
    %22 = vector.load %arg6[%c0_15, %c0_16] : memref<1x128xf32, #tpu.memory_space<vmem>>, vector<1x128xf32>
    %23 = vector.broadcast %22 : vector<1x128xf32> to vector<8x128xf32>
    %24 = arith.addf %21, %23 : vector<8x128xf32>
    %cst_17 = arith.constant 1.000000e-01 : f32
    %25 = vector.broadcast %cst_17 : f32 to vector<8x128xf32>
    %26 = arith.mulf %25, %24 : vector<8x128xf32>
    %27 = arith.maximumf %24, %26 : vector<8x128xf32>
    %28 = arith.truncf %27 : vector<8x128xf32> to vector<8x128xbf16>
    %c0_18 = arith.constant 0 : index
    %c0_19 = arith.constant 0 : index
    %29 = vector.load %arg7[%c0_18, %c0_19] : memref<128x128xbf16, #tpu.memory_space<vmem>>, vector<128x128xbf16>
    %cst_20 = arith.constant dense<0.000000e+00> : vector<8x128xf32>
    %30 = tpu.matmul %28, %29, %cst_20 {dimension_numbers = #tpu.dot_dimension_numbers<[1], [0], [0], [1], [0, 0, 1, 1], [], []>} : vector<8x128xbf16>, vector<128x128xbf16>, vector<8x128xf32> -> vector<8x128xf32>
    %c0_21 = arith.constant 0 : index
    %c0_22 = arith.constant 0 : index
    %31 = vector.load %arg8[%c0_21, %c0_22] : memref<1x128xf32, #tpu.memory_space<vmem>>, vector<1x128xf32>
    %32 = vector.broadcast %31 : vector<1x128xf32> to vector<8x128xf32>
    %33 = arith.addf %30, %32 : vector<8x128xf32>
    %c0_23 = arith.constant 0 : index
    %c0_24 = arith.constant 0 : index
    %34 = vector.load %arg9[%c0_23, %c0_24] : memref<8x128xf32, #tpu.memory_space<vmem>>, vector<8x128xf32>
    tpu.vector_store %arg9[%c0_23, %c0_24], %33 {strides = array<i32>} : memref<8x128xf32, #tpu.memory_space<vmem>>, vector<8x128xf32>,
    return
  }
}

</mosaic_0001>

<bundles_post_ra>
// kernel: tpu_custom_call.1
= control target key start
LH: loop header
LB: loop body
LE: loop exit
PB: predicated region body
PF: predicated region fallthrough
CT: control target
= control target key end

     0   :  { %14 = vsyncpa [#allocation3], 0  ;;  %s2590_s0 = inlined_call_operand.vmem [shape: f32[8,3], index: 0, kind: input, shape index: {}]   ;;  %s2591_s1 = inlined_call_operand.hbm [shape: bf16[3,1024], index: 1, kind: input, shape index: {}]   ;;  %s2592_s2 = inlined_call_operand.vmem [shape: f32[1,1024], index: 2, kind: input, shape index: {}]   ;;  %s2593_s3 = inlined_call_operand.hbm [shape: bf16[1024,256], index: 3, kind: input, shape index: {}]   ;;  %s2594_s4 = inlined_call_operand.vmem [shape: f32[1,256], index: 4, kind: input, shape index: {}]   ;;  %s2595_s5 = inlined_call_operand.hbm [shape: bf16[256,128], index: 5, kind: input, shape index: {}]   ;;  %s2596_s6 = inlined_call_operand.vmem [shape: f32[1,128], index: 6, kind: input, shape index: {}]   ;;  %s2597_s7 = inlined_call_operand.hbm [shape: bf16[128,128], index: 7, kind: input, shape index: {}]   ;;  %s2598_s8 = inlined_call_operand.vmem [shape: f32[1,128], index: 8, kind: input, shape index: {}]   ;;  %s2599_s9 = inlined_call_operand.hbm [shape: f32[8,128], index: 9, kind: output, shape index: {}]  }
   0x1   :  { %15 = vsyncpa [#allocation6], 0 }
   0x2   :  { %16 = vsyncpa [#allocation9], 0  ;;  %s37_s11 = sshll.u32 %s2593_s3, 4  ;;  %s38_s11 = int_to_ptr.hbm [resolvable:$true] %s37_s11 }
   0x3   :  { %17 = vsyncpa [#allocation4], 0  ;;  %s2440_s12 = smov [#allocation5]   ;;  %s25_s16 = sshll.u32 %s2591_s1, 4  ;;  %s26_s16 = int_to_ptr.hbm [resolvable:$true] %s25_s16 }
   0x4   :  { %s39_s13 = sshll.u32 %s2440_s12, 4  ;;  %s2441_s17 = smov 128   ;;  %s40_s13 = int_to_ptr.vmem [resolvable:$true] %s39_s13 }
   0x5   :  { %s2442_s18 = smov 8   ;;  %s2443_s19 = smov [#allocation2]  }
   0x6   :  { %45 = dma.hbm_to_vmem [thread:$0]  %s38_s11, 16384, %s40_s13, [#allocation6], %s2441_s17, %s2441_s17, %s2442_s18  }
   0x7   :  { %s27_s20 = sshll.u32 %s2443_s19, 4  ;;  %s52_s23 = sshll.u32 %s2595_s5, 4  ;;  %s28_s20 = int_to_ptr.vmem [resolvable:$true] %s27_s20  ;;  %s53_s23 = int_to_ptr.hbm [resolvable:$true] %s52_s23 }
   0x8   :  { %30 = dma.hbm_to_vmem [thread:$0]  %s26_s16, 256, %s28_s20, [#allocation3]  }
   0x9   :  { %s2444_s3 = smov [#allocation7]   ;;  %s67_s1 = sshll.u32 %s2597_s7, 4  ;;  %s68_s1 = int_to_ptr.hbm [resolvable:$true] %s67_s1 }
   0xa   :  { %s54_s24 = sshll.u32 %s2444_s3, 4  ;;  %s2445_s27 = smov 64   ;;  %s55_s24 = int_to_ptr.vmem [resolvable:$true] %s54_s24 }
   0xb   :  { %s2446_s28 = smov 4   ;;  %s2447_s29 = smov [#allocation8]  }
   0xc   :  { %60 = dma.hbm_to_vmem [thread:$0]  %s53_s23, 2048, %s55_s24, [#allocation6], %s2445_s27, %s2445_s27, %s2446_s28  }
   0xd   :  { %s69_s30 = sshll.u32 %s2447_s29, 4  ;;  %s70_s30 = int_to_ptr.vmem [resolvable:$true] %s69_s30 }
   0xe   :  { %75 = dma.hbm_to_vmem [thread:$0]  %s68_s1, 1024, %s70_s30, [#allocation9], %s2445_s27, %s2445_s27, %s2446_s28  }
   0xf   :  { %2432 = dma.done.wait [#allocation3], 256  }
  0x10   :  { %2433 = vsyncadd [#allocation3], 4294967040 }
  0x11   :  { %2434 = dma.done.wait [#allocation6], 18432  }
  0x12   :  { %2435 = vsyncadd [#allocation6], 4294948864 }
  0x13   :  { %2436 = dma.done.wait [#allocation9], 1024  }
  0x14   :  { %2437 = vsyncadd [#allocation9], 4294966272  ;;  %v97_v0 = vld [vmem:[#allocation2] sm:$0xff]  ;;  %vm134_vm0 = vcmask 1040384   ;;  %v98_v1 = vld [vmem:[#allocation2 + $0x8] sm:$0xff]  ;;  %vm135_vm1 = vcmask 1041408  }
  0x15   :  { %118 = vst [vmem:[#allocation1] ss:$4 sm:$0xff] %v97_v0  ;;  %v2448_v2 = vmov 65535   ;;  %v95_v5 = vld [vmem:[%s2590_s0] sm:$0xff]  ;;  %vm130_vm2 = vcmask 23552   ;;  %s2449_s15 = smov [#allocation10]  }
  0x16   :  { %121 = vst [vmem:[#allocation1 + $0x20] ss:$4 sm:$0xff] %v98_v1  ;;  %v136_v3 = vsel %vm134_vm0, 4294967295, %v2448_v2  ;;  %v2515_v13 = vpack.c.bf16 %v95_v5, %v95_v5  ;;  %v1662_v23 = vld [vmem:[#allocation5 + $0xf0] sm:$0xf]  ;;  %s1518_s16 = sshll.u32 %s2449_s15, 4  ;;  %s1519_s16 = int_to_ptr.vmem [resolvable:$true] %s1518_s16 }
  0x17   :  { %v137_v4 = vsel %vm135_vm1, %v136_v3, 0  ;;  %v2179_v24 = vld [vmem:[#allocation5 + $0xf4] sm:$0xf0]  ;;  %v1654_v25 = vld [vmem:[#allocation5 + $0xe0] sm:$0xf]  ;;  %s1520_s19 = sshll.u32 %s2599_s9, 4  ;;  %s1521_s19 = int_to_ptr.hbm [resolvable:$true] %s1520_s19 }
  0x18   :  { %v1663_v26 = vor.u32 %v2179_v24, %v1662_v23  ;;  %v2177_v27 = vld [vmem:[#allocation5 + $0xe4] sm:$0xf0]  ;;  %v1598_v28 = vld [vmem:[#allocation5 + $0x70] sm:$0xf]  ;;  %v2163_v29 = vld [vmem:[#allocation5 + $0x74] sm:$0xf0] }
  0x19   :  { %v1599_v30 = vor.u32 %v2163_v29, %v1598_v28  ;;  %v1726_v31 = vld [vmem:[#allocation5 + $0x170] sm:$0xf]  ;;  %v2195_v32 = vld [vmem:[#allocation5 + $0x174] sm:$0xf0]  ;;  %v1655_v33 = vor.u32 %v2177_v27, %v1654_v25  ;;  %v1590_v36 = vld [vmem:[#allocation5 + $0x60] sm:$0xf] }
  0x1a   :  { %v1727_v34 = vor.u32 %v2195_v32, %v1726_v31  ;;  %v1646_v35 = vld [vmem:[#allocation5 + $0xd0] sm:$0xf]  ;;  %v2161_v37 = vld [vmem:[#allocation5 + $0x64] sm:$0xf0]  ;;  %v2175_v38 = vld [vmem:[#allocation5 + $0xd4] sm:$0xf0] }
  0x1b   :  { %v1718_v39 = vld [vmem:[#allocation5 + $0x160] sm:$0xf]  ;;  %v2193_v40 = vld [vmem:[#allocation5 + $0x164] sm:$0xf0]  ;;  %v1591_v41 = vor.u32 %v2161_v37, %v1590_v36  ;;  %v1582_v43 = vld [vmem:[#allocation5 + $0x50] sm:$0xf]  ;;  %v1647_v47 = vor.u32 %v2175_v38, %v1646_v35 }
  0x1c   :  { %v122_v6 = vld.sshfl [vmem:[#allocation1] sm:$0xff pattern:$0x73625140]  ;;  %v123_v7 = vld.sshfl [vmem:[#allocation1 + $0x8] sm:$0xff pattern:$0x73625140]  ;;  %v1719_v42 = vor.u32 %v2193_v40, %v1718_v39 }
  0x1d   :  { %v138_v8 = vand.u32 %v137_v4, %v122_v6  ;;  %v140_v9 = vand.u32 %v137_v4, %v123_v7  ;;  %v124_v10 = vld.sshfl [vmem:[#allocation1 + $0x10] sm:$0xff pattern:$0x73625140]  ;;  %v125_v11 = vld.sshfl [vmem:[#allocation1 + $0x18] sm:$0xff pattern:$0x73625140] }
  0x1e   :  { %v142_v12 = vand.u32 %v137_v4, %v124_v10  ;;  %v144_v14 = vand.u32 %v137_v4, %v125_v11  ;;  %v127_v15 = vld.sshfl [vmem:[#allocation1 + $0x28] sm:$0xff pattern:$0x73625140]  ;;  %v128_v16 = vld.sshfl [vmem:[#allocation1 + $0x30] sm:$0xff pattern:$0x73625140] }
  0x1f   :  { %161 = vmatpush.bf16.msra.mxu3 %v138_v8  ;;  %174 = vmatpush.bf16.msra.mxu1 %v140_v9  ;;  %v148_v17 = vand.u32 %v137_v4, %v127_v15  ;;  %v150_v18 = vand.u32 %v137_v4, %v128_v16  ;;  %v126_v19 = vld.sshfl [vmem:[#allocation1 + $0x20] sm:$0xff pattern:$0x73625140]  ;;  %v129_v20 = vld.sshfl [vmem:[#allocation1 + $0x38] sm:$0xff pattern:$0x73625140] }
  0x20   :  { %187 = vmatpush.bf16.msra.mxu2 %v142_v12  ;;  %v146_v21 = vand.u32 %v137_v4, %v126_v19  ;;  %v152_v22 = vand.u32 %v137_v4, %v129_v20  ;;  %v2159_v44 = vld [vmem:[#allocation5 + $0x54] sm:$0xf0]  ;;  %v1710_v45 = vld [vmem:[#allocation5 + $0x150] sm:$0xf]  ;;  %v1638_v48 = vld [vmem:[#allocation5 + $0xc0] sm:$0xf] }
  0x21   :  { %v2191_v46 = vld [vmem:[#allocation5 + $0x154] sm:$0xf0]  ;;  %v2173_v49 = vld [vmem:[#allocation5 + $0xc4] sm:$0xf0]  ;;  %v1583_v50 = vor.u32 %v2159_v44, %v1582_v43  ;;  %v1574_v52 = vld [vmem:[#allocation5 + $0x40] sm:$0xf] }
  0x22   :  { %1532 = vmatmul.msk.bf16.vlgmr.msra.gmra.mxu3 %vm130_vm2, %v2515_v13  ;;  %1533 = vmatmul.msk.bf16.vlgmr.msra.gmra.mxu1 %vm130_vm2, %v2515_v13  ;;  %v1711_v51 = vor.u32 %v2191_v46, %v1710_v45  ;;  %v2157_v53 = vld [vmem:[#allocation5 + $0x44] sm:$0xf0]  ;;  %v1702_v54 = vld [vmem:[#allocation5 + $0x140] sm:$0xf]  ;;  %v1639_v55 = vor.u32 %v2173_v49, %v1638_v48  ;;  %v1790_v57 = vld [vmem:[#allocation5 + $0x1f0] sm:$0xf] }
  0x23   :  { %200 = vmatpush.bf16.msrb.mxu3 %v144_v14  ;;  %226 = vmatpush.bf16.msrb.mxu1 %v148_v17  ;;  %v2189_v56 = vld [vmem:[#allocation5 + $0x144] sm:$0xf0]  ;;  %v2211_v58 = vld [vmem:[#allocation5 + $0x1f4] sm:$0xf0]  ;;  %v1630_v59 = vld [vmem:[#allocation5 + $0xb0] sm:$0xf]  ;;  %v1575_v61 = vor.u32 %v2157_v53, %v1574_v52 }
  0x24   :  { %239 = vmatpush.bf16.msrb.mxu2 %v150_v18  ;;  %213 = vmatpush.bf16.msra.mxu0 %v146_v21  ;;  %v2171_v60 = vld [vmem:[#allocation5 + $0xb4] sm:$0xf0]  ;;  %v1703_v62 = vor.u32 %v2189_v56, %v1702_v54  ;;  %v1566_v63 = vld [vmem:[#allocation5 + $0x30] sm:$0xf]  ;;  %v1791_v2 = vor.u32 %v2211_v58, %v1790_v57  ;;  %v1782_v5 = vld [vmem:[#allocation5 + $0x1e0] sm:$0xf] }
  0x25   :  { %1534 = vmatmul.msk.bf16.vlgmr.msra.gmra.mxu2 %vm130_vm2, %v2515_v13  ;;  %v2155_v0 = vld [vmem:[#allocation5 + $0x34] sm:$0xf0]  ;;  %v1694_v1 = vld [vmem:[#allocation5 + $0x130] sm:$0xf]  ;;  %v1631_v3 = vor.u32 %v2171_v60, %v1630_v59  ;;  %v2209_v6 = vld [vmem:[#allocation5 + $0x1e4] sm:$0xf0] }
  0x26   :  { %v2187_v4 = vld [vmem:[#allocation5 + $0x134] sm:$0xf0]  ;;  %v1622_v7 = vld [vmem:[#allocation5 + $0xa0] sm:$0xf]  ;;  %v2169_v8 = vld [vmem:[#allocation5 + $0xa4] sm:$0xf0]  ;;  %v1567_v9 = vor.u32 %v2155_v0, %v1566_v63  ;;  %v1783_v15 = vor.u32 %v2209_v6, %v1782_v5 }
  0x27   :  { %252 = vmatpush.bf16.msra.mxu3 %v152_v22  ;;  %1069 = vmatpush.bf16.msra.mxu1 %v1663_v26  ;;  %v1695_v10 = vor.u32 %v2187_v4, %v1694_v1  ;;  %v1558_v11 = vld [vmem:[#allocation5 + $0x20] sm:$0xf]  ;;  %v2153_v12 = vld [vmem:[#allocation5 + $0x24] sm:$0xf0]  ;;  %v1623_v16 = vor.u32 %v2169_v8, %v1622_v7  ;;  %v1774_v18 = vld [vmem:[#allocation5 + $0x1d0] sm:$0xf] }
  0x28   :  { %1536 = vmatmul.msk.bf16.vlgmr.msra.gmra.mxu0 %vm130_vm2, %v2515_v13  ;;  %1082 = vmatpush.bf16.msra.mxu2 %v1727_v34  ;;  %v1686_v14 = vld [vmem:[#allocation5 + $0x120] sm:$0xf]  ;;  %v2185_v17 = vld [vmem:[#allocation5 + $0x124] sm:$0xf0]  ;;  %v2207_v19 = vld [vmem:[#allocation5 + $0x1d4] sm:$0xf0]  ;;  %v1559_v22 = vor.u32 %v2153_v12, %v1558_v11 }
  0x29   :  { %1056 = vmatpush.bf16.msrb.mxu0 %v1599_v30  ;;  %v1614_v20 = vld [vmem:[#allocation5 + $0x90] sm:$0xf]  ;;  %v2167_v21 = vld [vmem:[#allocation5 + $0x94] sm:$0xf0]  ;;  %v1687_v23 = vor.u32 %v2185_v17, %v1686_v14  ;;  %v1775_v27 = vor.u32 %v2207_v19, %v1774_v18  ;;  %v1766_v30 = vld [vmem:[#allocation5 + $0x1c0] sm:$0xf] }
  0x2a   :  { %v1550_v24 = vld [vmem:[#allocation5 + $0x10] sm:$0xf]  ;;  %v2151_v25 = vld [vmem:[#allocation5 + $0x14] sm:$0xf0]  ;;  %v1615_v28 = vor.u32 %v2167_v21, %v1614_v20  ;;  %v2205_v31 = vld [vmem:[#allocation5 + $0x1c4] sm:$0xf0] }
  0x2b   :  { %1070 = vmatpush.bf16.msra.mxu1 %v1655_v33  ;;  %v1678_v26 = vld [vmem:[#allocation5 + $0x110] sm:$0xf]  ;;  %v2183_v29 = vld [vmem:[#allocation5 + $0x114] sm:$0xf0]  ;;  %v1606_v32 = vld [vmem:[#allocation5 + $0x80] sm:$0xf]  ;;  %v1551_v36 = vor.u32 %v2151_v25, %v1550_v24 }
  0x2c   :  { %1083 = vmatpush.bf16.msra.mxu2 %v1719_v42  ;;  %v2165_v33 = vld [vmem:[#allocation5 + $0x84] sm:$0xf0]  ;;  %v1918_v34 = vld [vmem:[#allocation5 + $0x2f0] sm:$0xf]  ;;  %v2243_v35 = vld [vmem:[#allocation5 + $0x2f4] sm:$0xf0]  ;;  %v1679_v38 = vor.u32 %v2183_v29, %v1678_v26  ;;  %v1767_v42 = vor.u32 %v2205_v31, %v1766_v30 }
  0x2d   :  { %1057 = vmatpush.bf16.msrb.mxu0 %v1591_v41  ;;  %v1542_v37 = vld [vmem:[#allocation5] sm:$0xf]  ;;  %v2149_v39 = vld [vmem:[#allocation5 + $0x4] sm:$0xf0]  ;;  %v1607_v43 = vor.u32 %v2165_v33, %v1606_v32  ;;  %v1854_v44 = vld [vmem:[#allocation5 + $0x270] sm:$0xf] }
  0x2e   :  { %v1670_v40 = vld [vmem:[#allocation5 + $0x100] sm:$0xf]  ;;  %v2181_v41 = vld [vmem:[#allocation5 + $0x104] sm:$0xf0]  ;;  %v2227_v45 = vld [vmem:[#allocation5 + $0x274] sm:$0xf0]  ;;  %v1543_v53 = vor.u32 %v2149_v39, %v1542_v37 }
  0x2f   :  { %1071 = vmatpush.bf16.msra.mxu1 %v1647_v47  ;;  %v1982_v46 = vld [vmem:[#allocation5 + $0x370] sm:$0xf]  ;;  %v1919_v47 = vor.u32 %v2243_v35, %v1918_v34  ;;  %v2259_v48 = vld [vmem:[#allocation5 + $0x374] sm:$0xf0]  ;;  %v2241_v52 = vld [vmem:[#allocation5 + $0x2e4] sm:$0xf0]  ;;  %v1671_v54 = vor.u32 %v2181_v41, %v1670_v40 }
  0x30   :  { %1084 = vmatpush.bf16.msra.mxu2 %v1711_v51  ;;  %v1758_v49 = vld [vmem:[#allocation5 + $0x1b0] sm:$0xf]  ;;  %v1910_v51 = vld [vmem:[#allocation5 + $0x2e0] sm:$0xf]  ;;  %v1983_v56 = vor.u32 %v2259_v48, %v1982_v46  ;;  %v2225_v59 = vld [vmem:[#allocation5 + $0x264] sm:$0xf0] }
  0x31   :  { %1058 = vmatpush.bf16.msrb.mxu0 %v1583_v50  ;;  %v2203_v50 = vld [vmem:[#allocation5 + $0x1b4] sm:$0xf0]  ;;  %v1846_v58 = vld [vmem:[#allocation5 + $0x260] sm:$0xf]  ;;  %v2201_v0 = vld [vmem:[#allocation5 + $0x1a4] sm:$0xf0] }
  0x32   :  { %1535 = vmatmul.msk.bf16.vlgmr.msrb.gmra.mxu3 %vm130_vm2, %v2515_v13  ;;  %1537 = vmatmul.msk.bf16.vlgmr.msrb.gmra.mxu1 %vm130_vm2, %v2515_v13  ;;  %v1759_v57 = vor.u32 %v2203_v50, %v1758_v49  ;;  %v1974_v60 = vld [vmem:[#allocation5 + $0x360] sm:$0xf]  ;;  %v1902_v1 = vld [vmem:[#allocation5 + $0x2d0] sm:$0xf]  ;;  %v2223_v7 = vld [vmem:[#allocation5 + $0x254] sm:$0xf0] }
  0x33   :  { %1072 = vmatpush.bf16.msra.mxu1 %v1639_v55  ;;  %1095 = vmatpush.bf16.msrb.mxu3 %v1791_v2  ;;  %v1855_v55 = vor.u32 %v2227_v45, %v1854_v44  ;;  %v1750_v63 = vld [vmem:[#allocation5 + $0x1a0] sm:$0xf]  ;;  %v2239_v2 = vld [vmem:[#allocation5 + $0x2d4] sm:$0xf0]  ;;  %v1838_v6 = vld [vmem:[#allocation5 + $0x250] sm:$0xf] }
  0x34   :  { %1085 = vmatpush.bf16.msra.mxu2 %v1703_v62  ;;  %v2257_v62 = vld [vmem:[#allocation5 + $0x364] sm:$0xf0]  ;;  %v1751_v5 = vor.u32 %v2201_v0, %v1750_v63  ;;  %v1966_v8 = vld [vmem:[#allocation5 + $0x350] sm:$0xf]  ;;  %v2199_v11 = vld [vmem:[#allocation5 + $0x194] sm:$0xf0] }
  0x35   :  { %1538 = vmatmul.msk.bf16.vlgmr.msrb.gmra.mxu2 %vm130_vm2, %v2515_v13  ;;  %1059 = vmatpush.bf16.msrb.mxu0 %v1575_v61  ;;  %v1911_v61 = vor.u32 %v2241_v52, %v1910_v51  ;;  %v1975_v4 = vor.u32 %v2257_v62, %v1974_v60  ;;  %v1894_v12 = vld [vmem:[#allocation5 + $0x2c0] sm:$0xf]  ;;  %v2237_v14 = vld [vmem:[#allocation5 + $0x2c4] sm:$0xf0]  ;;  %v2235_v24 = vld [vmem:[#allocation5 + $0x2b4] sm:$0xf0] }
  0x36   :  { %v1830_v18 = vld [vmem:[#allocation5 + $0x240] sm:$0xf]  ;;  %v2221_v19 = vld [vmem:[#allocation5 + $0x244] sm:$0xf0]  ;;  %v1895_v20 = vor.u32 %v2237_v14, %v1894_v12  ;;  %v1822_v34 = vld [vmem:[#allocation5 + $0x230] sm:$0xf] }
  0x37   :  { %1073 = vmatpush.bf16.msra.mxu1 %v1631_v3  ;;  %1096 = vmatpush.bf16.msrb.mxu3 %v1783_v15  ;;  %v1847_v3 = vor.u32 %v2225_v59, %v1846_v58  ;;  %v1839_v15 = vor.u32 %v2223_v7, %v1838_v6  ;;  %v1958_v21 = vld [vmem:[#allocation5 + $0x340] sm:$0xf]  ;;  %v1831_v25 = vor.u32 %v2221_v19, %v1830_v18  ;;  %v2233_v29 = vld [vmem:[#allocation5 + $0x2a4] sm:$0xf0]  ;;  %v2219_v35 = vld [vmem:[#allocation5 + $0x234] sm:$0xf0] }
  0x38   :  { %1086 = vmatpush.bf16.msra.mxu2 %v1695_v10  ;;  %v1742_v10 = vld [vmem:[#allocation5 + $0x190] sm:$0xf]  ;;  %v1734_v31 = vld [vmem:[#allocation5 + $0x180] sm:$0xf]  ;;  %v2197_v32 = vld [vmem:[#allocation5 + $0x184] sm:$0xf0]  ;;  %v1823_v37 = vor.u32 %v2219_v35, %v1822_v34 }
  0x39   :  { %1060 = vmatpush.bf16.msrb.mxu0 %v1567_v9  ;;  %v2255_v9 = vld [vmem:[#allocation5 + $0x354] sm:$0xf0]  ;;  %v1743_v17 = vor.u32 %v2199_v11, %v1742_v10  ;;  %v1735_v33 = vor.u32 %v2197_v32, %v1734_v31  ;;  %v2046_v39 = vld [vmem:[#allocation5 + $0x3f0] sm:$0xf]  ;;  %v1814_v46 = vld [vmem:[#allocation5 + $0x220] sm:$0xf] }
  0x3a   :  { %v2275_v40 = vld [vmem:[#allocation5 + $0x3f4] sm:$0xf0]  ;;  %v1942_v48 = vld [vmem:[#allocation5 + $0x320] sm:$0xf]  ;;  %v2249_v50 = vld [vmem:[#allocation5 + $0x324] sm:$0xf0] }
  0x3b   :  { %1074 = vmatpush.bf16.msra.mxu1 %v1623_v16  ;;  %1097 = vmatpush.bf16.msrb.mxu3 %v1775_v27  ;;  %v1967_v16 = vor.u32 %v2255_v9, %v1966_v8  ;;  %v2231_v44 = vld [vmem:[#allocation5 + $0x294] sm:$0xf0]  ;;  %v2038_v51 = vld [vmem:[#allocation5 + $0x3e0] sm:$0xf]  ;;  %v2273_v52 = vld [vmem:[#allocation5 + $0x3e4] sm:$0xf0] }
  0x3c   :  { %1087 = vmatpush.bf16.msra.mxu2 %v1687_v23  ;;  %v1886_v23 = vld [vmem:[#allocation5 + $0x2b0] sm:$0xf]  ;;  %v2215_v59 = vld [vmem:[#allocation5 + $0x214] sm:$0xf0]  ;;  %v2245_v7 = vld [vmem:[#allocation5 + $0x304] sm:$0xf0] }
  0x3d   :  { %1061 = vmatpush.bf16.msrb.mxu0 %v1559_v22  ;;  %v2253_v22 = vld [vmem:[#allocation5 + $0x344] sm:$0xf0]  ;;  %v1887_v27 = vor.u32 %v2235_v24, %v1886_v23  ;;  %v1806_v58 = vld [vmem:[#allocation5 + $0x210] sm:$0xf]  ;;  %v2247_v62 = vld [vmem:[#allocation5 + $0x314] sm:$0xf0] }
  0x3e   :  { %v1959_v26 = vor.u32 %v2253_v22, %v1958_v21  ;;  %v1934_v60 = vld [vmem:[#allocation5 + $0x310] sm:$0xf]  ;;  %v2271_v0 = vld [vmem:[#allocation5 + $0x3d4] sm:$0xf0]  ;;  %v2022_v8 = vld [vmem:[#allocation5 + $0x3c0] sm:$0xf] }
  0x3f   :  { %1075 = vmatpush.bf16.msra.mxu1 %v1615_v28  ;;  %1098 = vmatpush.bf16.msrb.mxu3 %v1767_v42  ;;  %v1878_v28 = vld [vmem:[#allocation5 + $0x2a0] sm:$0xf]  ;;  %v2047_v42 = vor.u32 %v2275_v40, %v2046_v39  ;;  %v2030_v63 = vld [vmem:[#allocation5 + $0x3d0] sm:$0xf]  ;;  %v2267_v12 = vld [vmem:[#allocation5 + $0x3b4] sm:$0xf0] }
  0x40   :  { %1088 = vmatpush.bf16.msra.mxu2 %v1679_v38  ;;  %v1879_v30 = vor.u32 %v2233_v29, %v1878_v28  ;;  %v2251_v38 = vld [vmem:[#allocation5 + $0x334] sm:$0xf0]  ;;  %v2014_v11 = vld [vmem:[#allocation5 + $0x3b0] sm:$0xf]  ;;  %v1990_v23 = vld [vmem:[#allocation5 + $0x380] sm:$0xf] }
  0x41   :  { %1062 = vmatpush.bf16.msrb.mxu0 %v1551_v36  ;;  %v1950_v36 = vld [vmem:[#allocation5 + $0x330] sm:$0xf]  ;;  %v2015_v14 = vor.u32 %v2267_v12, %v2014_v11  ;;  %v2263_v19 = vld [vmem:[#allocation5 + $0x394] sm:$0xf0]  ;;  %v2261_v24 = vld [vmem:[#allocation5 + $0x384] sm:$0xf0] }
  0x42   :  { %1539 = vmatmul.msk.bf16.vlgmr.msra.gmra.mxu3 %vm130_vm2, %v2515_v13  ;;  %v1903_v13 = vor.u32 %v2239_v2, %v1902_v1  ;;  %v1951_v41 = vor.u32 %v2251_v38, %v1950_v36  ;;  %v1935_v1 = vor.u32 %v2247_v62, %v1934_v60  ;;  %v2031_v2 = vor.u32 %v2271_v0, %v2030_v63  ;;  %v1998_v18 = vld [vmem:[#allocation5 + $0x390] sm:$0xf]  ;;  %v1664_v31 = vld [vmem:[#allocation5 + $0xf8] sm:$0xf0]  ;;  %v2176_v40 = vld [vmem:[#allocation5 + $0xe4] sm:$0xf] }
  0x43   :  { %1076 = vmatpush.bf16.msra.mxu1 %v1607_v43  ;;  %1099 = vmatpush.bf16.msrb.mxu3 %v1759_v57  ;;  %v1870_v43 = vld [vmem:[#allocation5 + $0x290] sm:$0xf]  ;;  %v1999_v21 = vor.u32 %v2263_v19, %v1998_v18  ;;  %v1592_v62 = vld [vmem:[#allocation5 + $0x68] sm:$0xf0]  ;;  %v2158_v11 = vld [vmem:[#allocation5 + $0x54] sm:$0xf] }
  0x44   :  { %1089 = vmatpush.bf16.msra.mxu2 %v1671_v54  ;;  %v1871_v45 = vor.u32 %v2231_v44, %v1870_v43  ;;  %v2039_v54 = vor.u32 %v2273_v52, %v2038_v51  ;;  %v2174_v52 = vld [vmem:[#allocation5 + $0xd4] sm:$0xf]  ;;  %v1584_v12 = vld [vmem:[#allocation5 + $0x58] sm:$0xf0] }
  0x45   :  { %1063 = vmatpush.bf16.msrb.mxu0 %v1543_v53  ;;  %v1943_v53 = vor.u32 %v2249_v50, %v1942_v48  ;;  %v1728_v50 = vld [vmem:[#allocation5 + $0x178] sm:$0xf0]  ;;  %v2170_v18 = vld [vmem:[#allocation5 + $0xb4] sm:$0xf] }
  0x47   :  { %1121 = vmatpush.bf16.msrb.mxu1 %v1919_v47  ;;  %1100 = vmatpush.bf16.msrb.mxu3 %v1751_v5  ;;  %v2217_v47 = vld [vmem:[#allocation5 + $0x224] sm:$0xf0]  ;;  %v1926_v5 = vld [vmem:[#allocation5 + $0x300] sm:$0xf] }
  0x48   :  { %1134 = vmatpush.bf16.msrb.mxu2 %v1983_v56  ;;  %v1815_v49 = vor.u32 %v2217_v47, %v1814_v46  ;;  %v2229_v56 = vld [vmem:[#allocation5 + $0x284] sm:$0xf0]  ;;  %v1927_v9 = vor.u32 %v2245_v7, %v1926_v5  ;;  %v1600_v46 = vld [vmem:[#allocation5 + $0x78] sm:$0xf0]  ;;  %v2172_v5 = vld [vmem:[#allocation5 + $0xc4] sm:$0xf] }
  0x49   :  { %1108 = vmatpush.bf16.msra.mxu0 %v1855_v55  ;;  %v1862_v55 = vld [vmem:[#allocation5 + $0x280] sm:$0xf] }
  0x4a   :  { %v1863_v57 = vor.u32 %v2229_v56, %v1862_v55 }
  0x4b   :  { %1122 = vmatpush.bf16.msrb.mxu1 %v1911_v61  ;;  %1101 = vmatpush.bf16.msrb.mxu3 %v1743_v17  ;;  %v1807_v61 = vor.u32 %v2215_v59, %v1806_v58 }
  0x4c   :  { %1135 = vmatpush.bf16.msrb.mxu2 %v1975_v4  ;;  %v2213_v4 = vld [vmem:[#allocation5 + $0x204] sm:$0xf0] }
  0x4d   :  { %1109 = vmatpush.bf16.msra.mxu0 %v1847_v3  ;;  %v1798_v3 = vld [vmem:[#allocation5 + $0x200] sm:$0xf] }
  0x4e   :  { %v1799_v6 = vor.u32 %v2213_v4, %v1798_v3  ;;  %v1720_v3 = vld [vmem:[#allocation5 + $0x168] sm:$0xf0] }
  0x4f   :  { %1123 = vmatpush.bf16.msrb.mxu1 %v1903_v13  ;;  %1102 = vmatpush.bf16.msrb.mxu3 %v1735_v33  ;;  %v2269_v13 = vld [vmem:[#allocation5 + $0x3c4] sm:$0xf0] }
  0x50   :  { %1136 = vmatpush.bf16.msrb.mxu2 %v1967_v16  ;;  %v2023_v10 = vor.u32 %v2269_v13, %v2022_v8  ;;  %v2265_v16 = vld [vmem:[#allocation5 + $0x3a4] sm:$0xf0] }
  0x51   :  { %1110 = vmatpush.bf16.msra.mxu0 %v1839_v15  ;;  %v2006_v15 = vld [vmem:[#allocation5 + $0x3a0] sm:$0xf] }
  0x52   :  { %v2007_v17 = vor.u32 %v2265_v16, %v2006_v15 }
  0x53   :  { %1124 = vmatpush.bf16.msrb.mxu1 %v1895_v20  ;;  %1147 = vmatpush.bf16.msra.mxu3 %v2047_v42  ;;  %v2536_v20 = vld [vmem:[%s2592_s2] sm:$0xff] }
  0x54   :  { %1137 = vmatpush.bf16.msrb.mxu2 %v1959_v26  ;;  %v102_v22 = vperm.slane %v2536_v20, 1  ;;  %v101_v28 = vperm.slane %v2536_v20, 0  ;;  %v103_v32 = vperm.slane %v2536_v20, 2  ;;  %v106_v60 = vperm.slane %v2536_v20, 5 }
  0x55   :  { %1111 = vmatpush.bf16.msra.mxu0 %v1831_v25  ;;  %v1991_v25 = vor.u32 %v2261_v24, %v1990_v23  ;;  %v104_v16 = vperm.slane %v2536_v20, 3  ;;  %v107_v23 = vperm.slane %v2536_v20, 6  ;;  %v1587_v24 = vor.u32 %v2158_v11, %v1584_v12  ;;  %v2242_v12 = vld [vmem:[#allocation5 + $0x2f4] sm:$0xf] }
  0x57   :  { %1125 = vmatpush.bf16.msrb.mxu1 %v1887_v27  ;;  %1148 = vmatpush.bf16.msra.mxu3 %v2039_v54  ;;  %v105_v54 = vperm.slane %v2536_v20, 4 }
  0x58   :  { %1138 = vmatpush.bf16.msrb.mxu2 %v1951_v41  ;;  %v1656_v41 = vld [vmem:[#allocation5 + $0xe8] sm:$0xf0] }
  0x59   :  { %1112 = vmatpush.bf16.msra.mxu0 %v1823_v37  ;;  %v1659_v48 = vor.u32 %v2176_v40, %v1656_v41 }
  0x5b   :  { %1126 = vmatpush.bf16.msrb.mxu1 %v1879_v30  ;;  %1149 = vmatpush.bf16.msra.mxu3 %v2031_v2  ;;  %v2178_v30 = vld [vmem:[#allocation5 + $0xf4] sm:$0xf]  ;;  %v2192_v2 = vld [vmem:[#allocation5 + $0x164] sm:$0xf] }
  0x5c   :  { %1139 = vmatpush.bf16.msrb.mxu2 %v1943_v53  ;;  %v1667_v36 = vor.u32 %v2178_v30, %v1664_v31  ;;  %v1648_v53 = vld [vmem:[#allocation5 + $0xd8] sm:$0xf0]  ;;  %v2188_v31 = vld [vmem:[#allocation5 + $0x144] sm:$0xf] }
  0x5d   :  { %1113 = vmatpush.bf16.msra.mxu0 %v1815_v49  ;;  %v2194_v49 = vld [vmem:[#allocation5 + $0x174] sm:$0xf] }
  0x5e   :  { %v1731_v59 = vor.u32 %v2194_v49, %v1728_v50 }
  0x5f   :  { %1127 = vmatpush.bf16.msrb.mxu1 %v1871_v45  ;;  %1150 = vmatpush.bf16.msra.mxu3 %v2023_v10  ;;  %v2162_v45 = vld [vmem:[#allocation5 + $0x74] sm:$0xf]  ;;  %v1723_v10 = vor.u32 %v2192_v2, %v1720_v3  ;;  %v2184_v2 = vld [vmem:[#allocation5 + $0x124] sm:$0xf] }
  0x60   :  { %1140 = vmatpush.bf16.msrb.mxu2 %v1935_v1  ;;  %v1603_v56 = vor.u32 %v2162_v45, %v1600_v46  ;;  %v1651_v1 = vor.u32 %v2174_v52, %v1648_v53  ;;  %v1792_v52 = vld [vmem:[#allocation5 + $0x1f8] sm:$0xf0] }
  0x61   :  { %1114 = vmatpush.bf16.msra.mxu0 %v1807_v61  ;;  %v2160_v61 = vld [vmem:[#allocation5 + $0x64] sm:$0xf] }
  0x62   :  { %v1595_v13 = vor.u32 %v2160_v61, %v1592_v62 }
  0x63   :  { %1128 = vmatpush.bf16.msrb.mxu1 %v1863_v57  ;;  %1151 = vmatpush.bf16.msra.mxu3 %v2015_v14  ;;  %v2190_v14 = vld [vmem:[#allocation5 + $0x154] sm:$0xf] }
  0x64   :  { %1141 = vmatpush.bf16.msrb.mxu2 %v1927_v9 }
  0x65   :  { %1115 = vmatpush.bf16.msra.mxu0 %v1799_v6  ;;  %v1640_v6 = vld [vmem:[#allocation5 + $0xc8] sm:$0xf0] }
  0x66   :  { %v1643_v15 = vor.u32 %v2172_v5, %v1640_v6  ;;  %v1688_v6 = vld [vmem:[#allocation5 + $0x128] sm:$0xf0] }
  0x67   :  { %1152 = vmatpush.bf16.msra.mxu3 %v2007_v17  ;;  %v1712_v17 = vld [vmem:[#allocation5 + $0x158] sm:$0xf0] }
  0x6b   :  { %1153 = vmatpush.bf16.msra.mxu3 %v1999_v21 }
  0x6f   :  { %1154 = vmatpush.bf16.msra.mxu3 %v1991_v25 }
  0x9f   :  { %v176_v26 = vpop.f32.mrf.mxu1 }
  0xa0   :  { %v177_v27 = vadd.f32 %v176_v26, %v102_v22  ;;  %v1632_v22 = vld [vmem:[#allocation5 + $0xb8] sm:$0xf0]  ;;  %v1715_v26 = vor.u32 %v2190_v14, %v1712_v17  ;;  %v2150_v17 = vld [vmem:[#allocation5 + $0x14] sm:$0xf] }
  0xa1   :  { %v1635_v30 = vor.u32 %v2170_v18, %v1632_v22  ;;  %v1920_v14 = vld [vmem:[#allocation5 + $0x2f8] sm:$0xf0] }
  0xa2   :  { %v259_v29 = vmul.f32 0.1, %v177_v27  ;;  %v1552_v18 = vld [vmem:[#allocation5 + $0x18] sm:$0xf0] }
  0xa3   :  { %v1680_v22 = vld [vmem:[#allocation5 + $0x118] sm:$0xf0] }
  0xa4   :  { %v267_v34 = vmax.f32 %v177_v27, %v259_v29  ;;  %v2156_v27 = vld [vmem:[#allocation5 + $0x44] sm:$0xf] }
  0xa5   :  { %v215_v33 = vpop.f32.mrf.mxu0  ;;  %v163_v35 = vpop.f32.mrf.mxu3 }
  0xa6   :  { %v2541_v37 = vpack.c.bf16 %v267_v34, %v267_v34  ;;  %v164_v38 = vadd.f32 %v163_v35, %v101_v28  ;;  %v216_v7 = vadd.f32 %v215_v33, %v105_v54  ;;  %v1576_v28 = vld [vmem:[#allocation5 + $0x48] sm:$0xf0] }
  0xa7   :  { %v178_v43 = vpop.f32.mrf.mxu1  ;;  %v1579_v41 = vor.u32 %v2156_v27, %v1576_v28  ;;  %v1555_v27 = vor.u32 %v2150_v17, %v1552_v18  ;;  %v2240_v28 = vld [vmem:[#allocation5 + $0x2e4] sm:$0xf]  ;;  %v1888_v17 = vld [vmem:[#allocation5 + $0x2b8] sm:$0xf0] }
  0xa8   :  { %v189_v39 = vpop.f32.mrf.mxu2  ;;  %v258_v44 = vmul.f32 0.1, %v164_v38  ;;  %1077 = vmatmul.bf16.vlgmr.msra.gmra.mxu1 %v2541_v37  ;;  %v262_v21 = vmul.f32 0.1, %v216_v7  ;;  %v1568_v43 = vld [vmem:[#allocation5 + $0x38] sm:$0xf0] }
  0xa9   :  { %v190_v42 = vadd.f32 %v189_v39, %v103_v32  ;;  %1173 = vmatpush.bf16.msra.mxu1 %v1667_v36  ;;  %v1704_v32 = vld [vmem:[#allocation5 + $0x148] sm:$0xf0] }
  0xaa   :  { %v266_v51 = vmax.f32 %v164_v38, %v258_v44  ;;  %v270_v35 = vmax.f32 %v216_v7, %v262_v21  ;;  %v2168_v38 = vld [vmem:[#allocation5 + $0xa4] sm:$0xf]  ;;  %v1624_v39 = vld [vmem:[#allocation5 + $0xa8] sm:$0xf0]  ;;  %v1707_v46 = vor.u32 %v2188_v31, %v1704_v32 }
  0xab   :  { %v260_v47 = vmul.f32 0.1, %v190_v42  ;;  %v1627_v50 = vor.u32 %v2168_v38, %v1624_v39  ;;  %v2208_v7 = vld [vmem:[#allocation5 + $0x1e4] sm:$0xf] }
  0xac   :  { %v2545_v58 = vpack.c.bf16 %v266_v51, %v266_v51  ;;  %v2210_v51 = vld [vmem:[#allocation5 + $0x1f4] sm:$0xf]  ;;  %v2557_v54 = vpack.c.bf16 %v270_v35, %v270_v35  ;;  %v2180_v35 = vld [vmem:[#allocation5 + $0x104] sm:$0xf] }
  0xad   :  { %v268_v55 = vmax.f32 %v190_v42, %v260_v47  ;;  %v217_v57 = vpop.f32.mrf.mxu0  ;;  %1174 = vmatpush.bf16.msra.mxu1 %v1659_v48  ;;  %v165_v0 = vpop.f32.mrf.mxu3  ;;  %v2154_v42 = vld [vmem:[#allocation5 + $0x34] sm:$0xf]  ;;  %v1696_v48 = vld [vmem:[#allocation5 + $0x138] sm:$0xf0]  ;;  %v1795_v62 = vor.u32 %v2210_v51, %v1792_v52  ;;  %v2204_v39 = vld [vmem:[#allocation5 + $0x1c4] sm:$0xf] }
  0xae   :  { %1064 = vmatmul.bf16.vlgmr.msrb.gmra.mxu0 %v2545_v58  ;;  %v2186_v47 = vld [vmem:[#allocation5 + $0x134] sm:$0xf]  ;;  %v2152_v0 = vld [vmem:[#allocation5 + $0x24] sm:$0xf] }
  0xaf   :  { %v2548_v63 = vpack.c.bf16 %v268_v55, %v268_v55  ;;  %1160 = vmatpush.bf16.msrb.mxu0 %v1603_v56  ;;  %v228_v8 = vpop.f32.mrf.mxu1  ;;  %v2166_v55 = vld [vmem:[#allocation5 + $0x94] sm:$0xf]  ;;  %v1616_v56 = vld [vmem:[#allocation5 + $0x98] sm:$0xf0]  ;;  %v1699_v61 = vor.u32 %v2186_v47, %v1696_v48 }
  0xb0   :  { %v191_v4 = vpop.f32.mrf.mxu2  ;;  %v229_v9 = vadd.f32 %v228_v8, %v106_v60  ;;  %v1619_v5 = vor.u32 %v2166_v55, %v1616_v56  ;;  %v1784_v8 = vld [vmem:[#allocation5 + $0x1e8] sm:$0xf0]  ;;  %v2238_v47 = vld [vmem:[#allocation5 + $0x2d4] sm:$0xf]  ;;  %v1904_v48 = vld [vmem:[#allocation5 + $0x2d8] sm:$0xf0] }
  0xb1   :  { %1090 = vmatmul.bf16.vlgmr.msra.gmra.mxu2 %v2548_v63  ;;  %1175 = vmatpush.bf16.msra.mxu1 %v1651_v1  ;;  %v1560_v1 = vld [vmem:[#allocation5 + $0x28] sm:$0xf0]  ;;  %v2202_v55 = vld [vmem:[#allocation5 + $0x1b4] sm:$0xf]  ;;  %v1760_v56 = vld [vmem:[#allocation5 + $0x1b8] sm:$0xf0] }
  0xb2   :  { %1186 = vmatpush.bf16.msra.mxu2 %v1731_v59  ;;  %v263_v19 = vmul.f32 0.1, %v229_v9  ;;  %v1571_v59 = vor.u32 %v2154_v42, %v1568_v43  ;;  %v1563_v11 = vor.u32 %v2152_v0, %v1560_v1  ;;  %v1856_v43 = vld [vmem:[#allocation5 + $0x278] sm:$0xf0]  ;;  %v2256_v0 = vld [vmem:[#allocation5 + $0x364] sm:$0xf] }
  0xb3   :  { %1161 = vmatpush.bf16.msrb.mxu0 %v1595_v13  ;;  %v2164_v13 = vld [vmem:[#allocation5 + $0x84] sm:$0xf]  ;;  %v1976_v1 = vld [vmem:[#allocation5 + $0x368] sm:$0xf0] }
  0xb4   :  { %v271_v25 = vmax.f32 %v229_v9, %v263_v19  ;;  %v1608_v9 = vld [vmem:[#allocation5 + $0x88] sm:$0xf0]  ;;  %v2182_v19 = vld [vmem:[#allocation5 + $0x114] sm:$0xf] }
  0xb5   :  { %1176 = vmatpush.bf16.msra.mxu1 %v1643_v15  ;;  %v202_v29 = vpop.f32.mrf.mxu3  ;;  %v1691_v15 = vor.u32 %v2184_v2, %v1688_v6  ;;  %v1611_v21 = vor.u32 %v2164_v13, %v1608_v9  ;;  %v1683_v31 = vor.u32 %v2182_v19, %v1680_v22  ;;  %v2236_v2 = vld [vmem:[#allocation5 + $0x2c4] sm:$0xf]  ;;  %v1763_v6 = vor.u32 %v2202_v55, %v1760_v56  ;;  %v1752_v9 = vld [vmem:[#allocation5 + $0x1a8] sm:$0xf0]  ;;  %v2198_v22 = vld [vmem:[#allocation5 + $0x194] sm:$0xf] }
  0xb6   :  { %1187 = vmatpush.bf16.msra.mxu2 %v1723_v10  ;;  %v2554_v33 = vpack.c.bf16 %v271_v25, %v271_v25  ;;  %v203_v34 = vadd.f32 %v202_v29, %v104_v16  ;;  %v1787_v16 = vor.u32 %v2208_v7, %v1784_v8  ;;  %v108_v25 = vperm.slane %v2536_v20, 7  ;;  %v1912_v29 = vld [vmem:[#allocation5 + $0x2e8] sm:$0xf0]  ;;  %v2200_v13 = vld [vmem:[#allocation5 + $0x1a4] sm:$0xf] }
  0xb7   :  { %1162 = vmatpush.bf16.msrb.mxu0 %v1587_v24  ;;  %v230_v44 = vpop.f32.mrf.mxu1  ;;  %v1776_v24 = vld [vmem:[#allocation5 + $0x1d8] sm:$0xf0]  ;;  %v1915_v20 = vor.u32 %v2240_v28, %v1912_v29  ;;  %v1979_v7 = vor.u32 %v2256_v0, %v1976_v1  ;;  %v1755_v18 = vor.u32 %v2200_v13, %v1752_v9  ;;  %v1960_v28 = vld [vmem:[#allocation5 + $0x348] sm:$0xf0]  ;;  %v2232_v29 = vld [vmem:[#allocation5 + $0x2a4] sm:$0xf] }
  0xb8   :  { %v241_v36 = vpop.f32.mrf.mxu2  ;;  %v261_v45 = vmul.f32 0.1, %v203_v34  ;;  %1129 = vmatmul.bf16.vlgmr.msrb.gmra.mxu1 %v2554_v33  ;;  %v2258_v44 = vld [vmem:[#allocation5 + $0x374] sm:$0xf]  ;;  %v2040_v55 = vld [vmem:[#allocation5 + $0x3e8] sm:$0xf0] }
  0xb9   :  { %v242_v40 = vadd.f32 %v241_v36, %v107_v23  ;;  %1177 = vmatpush.bf16.msra.mxu1 %v1635_v30  ;;  %v2206_v23 = vld [vmem:[#allocation5 + $0x1d4] sm:$0xf]  ;;  %v2148_v30 = vld [vmem:[#allocation5 + $0x4] sm:$0xf]  ;;  %v1672_v36 = vld [vmem:[#allocation5 + $0x108] sm:$0xf0] }
  0xba   :  { %1188 = vmatpush.bf16.msra.mxu2 %v1715_v26  ;;  %v269_v53 = vmax.f32 %v203_v34, %v261_v45  ;;  %v1923_v26 = vor.u32 %v2242_v12, %v1920_v14  ;;  %v1779_v32 = vor.u32 %v2206_v23, %v1776_v24  ;;  %v1544_v34 = vld [vmem:[#allocation5 + $0x8] sm:$0xf0]  ;;  %v1984_v45 = vld [vmem:[#allocation5 + $0x378] sm:$0xf0]  ;;  %v2254_v14 = vld [vmem:[#allocation5 + $0x354] sm:$0xf] }
  0xbb   :  { %v264_v49 = vmul.f32 0.1, %v242_v40  ;;  %1163 = vmatpush.bf16.msrb.mxu0 %v1579_v41  ;;  %v2226_v41 = vld [vmem:[#allocation5 + $0x274] sm:$0xf]  ;;  %v1840_v12 = vld [vmem:[#allocation5 + $0x258] sm:$0xf0] }
  0xbc   :  { %v2559_v60 = vpack.c.bf16 %v269_v53, %v269_v53  ;;  %v1859_v52 = vor.u32 %v2226_v41, %v1856_v43  ;;  %v1987_v53 = vor.u32 %v2258_v44, %v1984_v45  ;;  %v1744_v23 = vld [vmem:[#allocation5 + $0x198] sm:$0xf0]  ;;  %v2220_v24 = vld [vmem:[#allocation5 + $0x244] sm:$0xf]  ;;  %v2274_v41 = vld [vmem:[#allocation5 + $0x3f4] sm:$0xf] }
  0xbd   :  { %v272_v57 = vmax.f32 %v242_v40, %v264_v49  ;;  %1178 = vmatpush.bf16.msra.mxu1 %v1627_v50  ;;  %v204_v4 = vpop.f32.mrf.mxu3  ;;  %v1768_v40 = vld [vmem:[#allocation5 + $0x1c8] sm:$0xf0]  ;;  %v1675_v50 = vor.u32 %v2180_v35, %v1672_v36  ;;  %v2218_v35 = vld [vmem:[#allocation5 + $0x234] sm:$0xf]  ;;  %v1824_v36 = vld [vmem:[#allocation5 + $0x238] sm:$0xf0] }
  0xbe   :  { %1189 = vmatpush.bf16.msra.mxu2 %v1707_v46  ;;  %1103 = vmatmul.bf16.vlgmr.msrb.gmra.mxu3 %v2559_v60  ;;  %v1547_v46 = vor.u32 %v2148_v30, %v1544_v34  ;;  %v1771_v51 = vor.u32 %v2204_v39, %v1768_v40  ;;  %v1896_v4 = vld [vmem:[#allocation5 + $0x2c8] sm:$0xf0]  ;;  %v2196_v30 = vld [vmem:[#allocation5 + $0x184] sm:$0xf]  ;;  %v2250_v39 = vld [vmem:[#allocation5 + $0x334] sm:$0xf]  ;;  %v1827_v45 = vor.u32 %v2218_v35, %v1824_v36 }
  0xbf   :  { %v2561_v3 = vpack.c.bf16 %v272_v57, %v272_v57  ;;  %1116 = vmatmul.bf16.vlgmr.msra.gmra.mxu0 %v2557_v54  ;;  %1199 = vmatpush.bf16.msrb.mxu3 %v1795_v62  ;;  %v2224_v57 = vld [vmem:[#allocation5 + $0x264] sm:$0xf]  ;;  %v1848_v62 = vld [vmem:[#allocation5 + $0x268] sm:$0xf0]  ;;  %v1952_v40 = vld [vmem:[#allocation5 + $0x338] sm:$0xf0] }
  0xc0   :  { %v243_v10 = vpop.f32.mrf.mxu2  ;;  %1164 = vmatpush.bf16.msrb.mxu0 %v1571_v59  ;;  %v1736_v34 = vld [vmem:[#allocation5 + $0x188] sm:$0xf0]  ;;  %v1872_v43 = vld [vmem:[#allocation5 + $0x298] sm:$0xf0]  ;;  %v2228_v56 = vld [vmem:[#allocation5 + $0x284] sm:$0xf] }
  0xc1   :  { %1142 = vmatmul.bf16.vlgmr.msrb.gmra.mxu2 %v2561_v3  ;;  %1179 = vmatpush.bf16.msra.mxu1 %v1619_v5  ;;  %v2222_v10 = vld [vmem:[#allocation5 + $0x254] sm:$0xf]  ;;  %v1739_v44 = vor.u32 %v2196_v30, %v1736_v34  ;;  %v2212_v9 = vld [vmem:[#allocation5 + $0x204] sm:$0xf]  ;;  %v2279_v34 = vld [vmem:[#allocation7 + $0x18] sm:$0xff] }
  0xc2   :  { %1190 = vmatpush.bf16.msra.mxu2 %v1699_v61  ;;  %v1907_v61 = vor.u32 %v2238_v47, %v1904_v48  ;;  %v1843_v19 = vor.u32 %v2222_v10, %v1840_v12  ;;  %v2216_v47 = vld [vmem:[#allocation5 + $0x224] sm:$0xf]  ;;  %v1816_v48 = vld [vmem:[#allocation5 + $0x228] sm:$0xf0]  ;;  %v2282_v30 = vld [vmem:[#allocation7 + $0x30] sm:$0xff] }
  0xc3   :  { %1200 = vmatpush.bf16.msrb.mxu3 %v1787_v16  ;;  %v2234_v16 = vld [vmem:[#allocation5 + $0x2b4] sm:$0xf]  ;;  %v2244_v12 = vld [vmem:[#allocation5 + $0x304] sm:$0xf] }
  0xc4   :  { %1165 = vmatpush.bf16.msrb.mxu0 %v1563_v11  ;;  %v1899_v11 = vor.u32 %v2236_v2, %v1896_v4  ;;  %v1808_v2 = vld [vmem:[#allocation5 + $0x218] sm:$0xf0]  ;;  %v2246_v4 = vld [vmem:[#allocation5 + $0x314] sm:$0xf] }
  0xc5   :  { %1180 = vmatpush.bf16.msra.mxu1 %v1611_v21  ;;  %v254_v38 = vpop.f32.mrf.mxu3  ;;  %v2278_v36 = vld [vmem:[#allocation7 + $0x10] sm:$0xff] }
  0xc6   :  { %1191 = vmatpush.bf16.msra.mxu2 %v1691_v15  ;;  %v255_v42 = vadd.f32 %v254_v38, %v108_v25  ;;  %v1968_v15 = vld [vmem:[#allocation5 + $0x358] sm:$0xf0]  ;;  %v1891_v25 = vor.u32 %v2234_v16, %v1888_v17  ;;  %v2024_v16 = vld [vmem:[#allocation5 + $0x3c8] sm:$0xf0] }
  0xc7   :  { %1201 = vmatpush.bf16.msrb.mxu3 %v1779_v32  ;;  %v1971_v21 = vor.u32 %v2254_v14, %v1968_v15  ;;  %v1928_v14 = vld [vmem:[#allocation5 + $0x308] sm:$0xf0]  ;;  %v2268_v15 = vld [vmem:[#allocation5 + $0x3c4] sm:$0xf] }
  0xc8   :  { %1166 = vmatpush.bf16.msrb.mxu0 %v1555_v27  ;;  %v265_v49 = vmul.f32 0.1, %v255_v42  ;;  %1181 = vmatmul.bf16.vlgmr.msra.gmra.mxu1 %v2541_v37  ;;  %v1851_v37 = vor.u32 %v2224_v57, %v1848_v62  ;;  %v2252_v27 = vld [vmem:[#allocation5 + $0x344] sm:$0xf]  ;;  %v1864_v57 = vld [vmem:[#allocation5 + $0x288] sm:$0xf0] }
  0xc9   :  { %1225 = vmatpush.bf16.msrb.mxu1 %v1923_v26  ;;  %v1832_v26 = vld [vmem:[#allocation5 + $0x248] sm:$0xf0]  ;;  %v1963_v32 = vor.u32 %v2252_v27, %v1960_v28  ;;  %v2214_v62 = vld [vmem:[#allocation5 + $0x214] sm:$0xf]  ;;  %v1867_v1 = vor.u32 %v2228_v56, %v1864_v57  ;;  %v2000_v27 = vld [vmem:[#allocation5 + $0x398] sm:$0xf0] }
  0xca   :  { %1192 = vmatpush.bf16.msra.mxu2 %v1683_v31  ;;  %v273_v59 = vmax.f32 %v255_v42, %v265_v49  ;;  %v1835_v31 = vor.u32 %v2220_v24, %v1832_v26  ;;  %v2048_v42 = vld [vmem:[#allocation5 + $0x3f8] sm:$0xf0]  ;;  %v2008_v24 = vld [vmem:[#allocation5 + $0x3a8] sm:$0xf0]  ;;  %v2262_v26 = vld [vmem:[#allocation5 + $0x394] sm:$0xf] }
  0xcb   :  { %1202 = vmatpush.bf16.msrb.mxu3 %v1771_v51  ;;  %v2051_v49 = vor.u32 %v2274_v41, %v2048_v42  ;;  %v2248_v51 = vld [vmem:[#allocation5 + $0x324] sm:$0xf]  ;;  %v2003_v28 = vor.u32 %v2262_v26, %v2000_v27  ;;  %v2291_v56 = vld [vmem:[#allocation7 + $0x78] sm:$0xff] }
  0xcc   :  { %1167 = vmatpush.bf16.msrb.mxu0 %v1547_v46  ;;  %v2568_v5 = vpack.c.bf16 %v273_v59, %v273_v59  ;;  %v1955_v46 = vor.u32 %v2250_v39, %v1952_v40  ;;  %v1819_v59 = vor.u32 %v2216_v47, %v1816_v48  ;;  %v2277_v40 = vld [vmem:[#allocation7 + $0x8] sm:$0xff] }
  0xcd   :  { %1226 = vmatpush.bf16.msrb.mxu1 %v1915_v20  ;;  %v256_v8 = vpop.f32.mrf.mxu3  ;;  %v2230_v20 = vld [vmem:[#allocation5 + $0x294] sm:$0xf] }
  0xce   :  { %1193 = vmatpush.bf16.msra.mxu2 %v1675_v50  ;;  %1155 = vmatmul.bf16.vlgmr.msra.gmra.mxu3 %v2568_v5  ;;  %v1875_v50 = vor.u32 %v2230_v20, %v1872_v43  ;;  %v1811_v8 = vor.u32 %v2214_v62, %v1808_v2  ;;  %v2276_v20 = vld [vmem:[#allocation7] sm:$0xff] }
  0xcf   :  { %1168 = vmatmul.bf16.vlgmr.msrb.gmra.mxu0 %v2545_v58  ;;  %1203 = vmatpush.bf16.msrb.mxu3 %v1763_v6  ;;  %v1880_v58 = vld [vmem:[#allocation5 + $0x2a8] sm:$0xf0]  ;;  %v1936_v6 = vld [vmem:[#allocation5 + $0x318] sm:$0xf0] }
  0xd0   :  { %1212 = vmatpush.bf16.msra.mxu0 %v1859_v52  ;;  %v1883_v38 = vor.u32 %v2232_v29, %v1880_v58  ;;  %v1944_v52 = vld [vmem:[#allocation5 + $0x328] sm:$0xf0]  ;;  %v1939_v13 = vor.u32 %v2246_v4, %v1936_v6 }
  0xd1   :  { %1227 = vmatpush.bf16.msrb.mxu1 %v1907_v61  ;;  %1194 = vmatmul.bf16.vlgmr.msra.gmra.mxu2 %v2548_v63  ;;  %v1747_v63 = vor.u32 %v2198_v22, %v1744_v23  ;;  %v1947_v61 = vor.u32 %v2248_v51, %v1944_v52  ;;  %v2264_v23 = vld [vmem:[#allocation5 + $0x3a4] sm:$0xf]  ;;  %v1992_v29 = vld [vmem:[#allocation5 + $0x388] sm:$0xf0] }
  0xd2   :  { %1238 = vmatpush.bf16.msrb.mxu2 %v1987_v53  ;;  %v2272_v53 = vld [vmem:[#allocation5 + $0x3e4] sm:$0xf]  ;;  %v2289_v4 = vld [vmem:[#allocation7 + $0x68] sm:$0xff] }
  0xd3   :  { %1204 = vmatpush.bf16.msrb.mxu3 %v1755_v18  ;;  %v2043_v0 = vor.u32 %v2272_v53, %v2040_v55  ;;  %v1931_v18 = vor.u32 %v2244_v12, %v1928_v14 }
  0xd4   :  { %1213 = vmatpush.bf16.msra.mxu0 %v1851_v37  ;;  %v2270_v37 = vld [vmem:[#allocation5 + $0x3d4] sm:$0xf] }
  0xd5   :  { %1228 = vmatpush.bf16.msrb.mxu1 %v1899_v11  ;;  %v1800_v11 = vld [vmem:[#allocation5 + $0x208] sm:$0xf0] }
  0xd6   :  { %1239 = vmatpush.bf16.msrb.mxu2 %v1979_v7  ;;  %v2032_v7 = vld [vmem:[#allocation5 + $0x3d8] sm:$0xf0]  ;;  %v1803_v17 = vor.u32 %v2212_v9, %v1800_v11 }
  0xd7   :  { %1205 = vmatpush.bf16.msrb.mxu3 %v1747_v63  ;;  %v2035_v10 = vor.u32 %v2270_v37, %v2032_v7  ;;  %v2283_v63 = vld [vmem:[#allocation7 + $0x38] sm:$0xff] }
  0xd8   :  { %1214 = vmatpush.bf16.msra.mxu0 %v1843_v19  ;;  %v2266_v19 = vld [vmem:[#allocation5 + $0x3b4] sm:$0xf]  ;;  %v2287_v11 = vld [vmem:[#allocation7 + $0x58] sm:$0xff] }
  0xd9   :  { %1229 = vmatpush.bf16.msrb.mxu1 %v1891_v25  ;;  %v2011_v25 = vor.u32 %v2264_v23, %v2008_v24 }
  0xda   :  { %1240 = vmatpush.bf16.msrb.mxu2 %v1971_v21  ;;  %v2016_v21 = vld [vmem:[#allocation5 + $0x3b8] sm:$0xf0] }
  0xdb   :  { %1206 = vmatpush.bf16.msrb.mxu3 %v1739_v44  ;;  %v2019_v22 = vor.u32 %v2266_v19, %v2016_v21  ;;  %v2284_v19 = vld [vmem:[#allocation7 + $0x40] sm:$0xff] }
  0xdc   :  { %1215 = vmatpush.bf16.msra.mxu0 %v1835_v31 }
  0xdd   :  { %1230 = vmatpush.bf16.msrb.mxu1 %v1883_v38 }
  0xde   :  { %1241 = vmatpush.bf16.msrb.mxu2 %v1963_v32  ;;  %1207 = vmatmul.bf16.vlgmr.msrb.gmra.mxu3 %v2559_v60  ;;  %v2027_v60 = vor.u32 %v2268_v15, %v2024_v16  ;;  %v2286_v16 = vld [vmem:[#allocation7 + $0x50] sm:$0xff] }
  0xdf   :  { %1251 = vmatpush.bf16.msra.mxu3 %v2051_v49 }
  0xe0   :  { %1216 = vmatpush.bf16.msra.mxu0 %v1827_v45 }
  0xe1   :  { %1231 = vmatpush.bf16.msrb.mxu1 %v1875_v50 }
  0xe2   :  { %1242 = vmatpush.bf16.msrb.mxu2 %v1955_v46 }
  0xe3   :  { %1252 = vmatpush.bf16.msra.mxu3 %v2043_v0 }
  0xe4   :  { %1217 = vmatpush.bf16.msra.mxu0 %v1819_v59 }
  0xe5   :  { %1232 = vmatpush.bf16.msrb.mxu1 %v1867_v1 }
  0xe6   :  { %1243 = vmatpush.bf16.msrb.mxu2 %v1947_v61  ;;  %v2290_v61 = vld [vmem:[#allocation7 + $0x70] sm:$0xff] }
  0xe7   :  { %1253 = vmatpush.bf16.msra.mxu3 %v2035_v10 }
  0xe8   :  { %1218 = vmatpush.bf16.msra.mxu0 %v1811_v8  ;;  %1233 = vmatmul.bf16.vlgmr.msrb.gmra.mxu1 %v2554_v33  ;;  %v2260_v33 = vld [vmem:[#allocation5 + $0x384] sm:$0xf] }
  0xe9   :  { %v1995_v58 = vor.u32 %v2260_v33, %v1992_v29  ;;  %1415 = vmatpush.bf16.msra.mxu1 %v2291_v56  ;;  %v2288_v8 = vld [vmem:[#allocation7 + $0x60] sm:$0xff] }
  0xea   :  { %1244 = vmatpush.bf16.msrb.mxu2 %v1939_v13 }
  0xeb   :  { %1254 = vmatpush.bf16.msra.mxu3 %v2027_v60 }
  0xec   :  { %1219 = vmatpush.bf16.msra.mxu0 %v1803_v17  ;;  %v2285_v17 = vld [vmem:[#allocation7 + $0x48] sm:$0xff] }
  0xed   :  { %1416 = vmatpush.bf16.msra.mxu1 %v2290_v61 }
  0xee   :  { %1245 = vmatpush.bf16.msrb.mxu2 %v1931_v18 }
  0xef   :  { %1220 = vmatmul.bf16.vlgmr.msra.gmra.mxu0 %v2557_v54  ;;  %1255 = vmatpush.bf16.msra.mxu3 %v2019_v22  ;;  %v2281_v54 = vld [vmem:[#allocation7 + $0x28] sm:$0xff] }
  0xf0   :  { %1402 = vmatpush.bf16.msrb.mxu0 %v2283_v63 }
  0xf1   :  { %1246 = vmatmul.bf16.vlgmr.msrb.gmra.mxu2 %v2561_v3  ;;  %v2280_v3 = vld [vmem:[#allocation7 + $0x20] sm:$0xff]  ;;  %1417 = vmatpush.bf16.msra.mxu1 %v2289_v4 }
  0xf3   :  { %1256 = vmatpush.bf16.msra.mxu3 %v2011_v25 }
  0xf4   :  { %1403 = vmatpush.bf16.msrb.mxu0 %v2282_v30 }
  0xf5   :  { %1418 = vmatpush.bf16.msra.mxu1 %v2288_v8 }
  0xf7   :  { %1257 = vmatpush.bf16.msra.mxu3 %v2003_v28 }
  0xf8   :  { %1404 = vmatpush.bf16.msrb.mxu0 %v2281_v54 }
  0xf9   :  { %1419 = vmatpush.bf16.msra.mxu1 %v2287_v11 }
  0xfb   :  { %1258 = vmatpush.bf16.msra.mxu3 %v1995_v58 }
  0xfc   :  { %1405 = vmatpush.bf16.msrb.mxu0 %v2280_v3 }
  0xfd   :  { %1420 = vmatpush.bf16.msra.mxu1 %v2286_v16 }
  0xfe   :  { %1259 = vmatmul.bf16.vlgmr.msra.gmra.mxu3 %v2568_v5  ;;  %v410_v5 = vld [vmem:[%s2594_s4] sm:$0x3] }
  0xff   :  { %v412_v42 = vperm.slane %v410_v5, 0  ;;  %v413_v23 = vperm.slane %v410_v5, 1  ;;  %v2296_v5 = vld [vmem:[#allocation8 + $0x20] sm:$0xff] }
 0x100   :  { %1406 = vmatpush.bf16.msrb.mxu0 %v2279_v34 }
 0x101   :  { %1421 = vmatpush.bf16.msra.mxu1 %v2285_v17 }
 0x104   :  { %1407 = vmatpush.bf16.msrb.mxu0 %v2278_v36 }
 0x105   :  { %1422 = vmatpush.bf16.msra.mxu1 %v2284_v19 }
 0x108   :  { %1408 = vmatpush.bf16.msrb.mxu0 %v2277_v40  ;;  %v2297_v40 = vld [vmem:[#allocation8 + $0x28] sm:$0xff] }
 0x10c   :  { %1409 = vmatpush.bf16.msrb.mxu0 %v2276_v20 }
 0x125   :  { %v1078_v31 = vpop.f32.mrf.mxu1 }
 0x12b   :  { %v1065_v32 = vpop.f32.mrf.mxu0 }
 0x12c   :  { %v1066_v45 = vadd.f32 %v1065_v32, %v412_v42  ;;  %v2294_v42 = vld [vmem:[#allocation8 + $0x10] sm:$0xff] }
 0x12d   :  { %v1080_v35 = vpop.f32.mrf.mxu1 }
 0x12e   :  { %v1079_v47 = vadd.f32 %v1078_v31, %v1066_v45  ;;  %v2292_v45 = vld [vmem:[#allocation8] sm:$0xff] }
 0x133   :  { %v1067_v39 = vpop.f32.mrf.mxu0 }
 0x134   :  { %v1091_v38 = vpop.f32.mrf.mxu2  ;;  %v2298_v39 = vld [vmem:[#allocation8 + $0x30] sm:$0xff] }
 0x135   :  { %v1130_v41 = vpop.f32.mrf.mxu1  ;;  %v1092_v49 = vadd.f32 %v1091_v38, %v1079_v47  ;;  %v2299_v38 = vld [vmem:[#allocation8 + $0x38] sm:$0xff] }
 0x136   :  { %1499 = vmatpush.bf16.msra.mxu2 %v2299_v38 }
 0x13a   :  { %1500 = vmatpush.bf16.msra.mxu2 %v2298_v39 }
 0x13c   :  { %v1093_v43 = vpop.f32.mrf.mxu2  ;;  %v1117_v44 = vpop.f32.mrf.mxu0 }
 0x13d   :  { %v1132_v46 = vpop.f32.mrf.mxu1 }
 0x13e   :  { %1501 = vmatpush.bf16.msra.mxu2 %v2297_v40  ;;  %v2310_v46 = vld [vmem:[%s2596_s6] ss:$0 sm:$0xff] }
 0x141   :  { %v1104_v48 = vpop.f32.mrf.mxu3 }
 0x142   :  { %v1105_v52 = vadd.f32 %v1104_v48, %v1092_v49  ;;  %1502 = vmatpush.bf16.msra.mxu2 %v2296_v5 }
 0x144   :  { %v1143_v50 = vpop.f32.mrf.mxu2  ;;  %v1119_v51 = vpop.f32.mrf.mxu0  ;;  %v1118_v55 = vadd.f32 %v1117_v44, %v1105_v52  ;;  %v2293_v44 = vld [vmem:[#allocation8 + $0x8] sm:$0xff] }
 0x145   :  { %v1182_v53 = vpop.f32.mrf.mxu1 }
 0x146   :  { %v1131_v62 = vadd.f32 %v1130_v41, %v1118_v55  ;;  %v2295_v41 = vld [vmem:[#allocation8 + $0x18] sm:$0xff]  ;;  %v2311_v55 = vld [vmem:[%s2598_s8] ss:$0 sm:$0xff] }
 0x147   :  { %1503 = vmatpush.bf16.msra.mxu2 %v2295_v41 }
 0x148   :  { %v1144_v2 = vadd.f32 %v1143_v50, %v1131_v62 }
 0x149   :  { %v1106_v57 = vpop.f32.mrf.mxu3 }
 0x14b   :  { %1504 = vmatpush.bf16.msra.mxu2 %v2294_v42 }
 0x14c   :  { %v1145_v59 = vpop.f32.mrf.mxu2  ;;  %v1169_v0 = vpop.f32.mrf.mxu0 }
 0x14d   :  { %v1184_v1 = vpop.f32.mrf.mxu1  ;;  %v1170_v25 = vadd.f32 %v1169_v0, %v413_v23 }
 0x14f   :  { %v1183_v28 = vadd.f32 %v1182_v53, %v1170_v25  ;;  %1505 = vmatpush.bf16.msra.mxu2 %v2293_v44 }
 0x151   :  { %v1156_v6 = vpop.f32.mrf.mxu3 }
 0x152   :  { %v1157_v37 = vadd.f32 %v1156_v6, %v1144_v2 }
 0x153   :  { %1506 = vmatpush.bf16.msra.mxu2 %v2292_v45 }
 0x154   :  { %v1195_v7 = vpop.f32.mrf.mxu2  ;;  %v1264_v13 = vmul.f32 0.1, %v1157_v37  ;;  %v1171_v9 = vpop.f32.mrf.mxu0 }
 0x155   :  { %v1196_v33 = vadd.f32 %v1195_v7, %v1183_v28 }
 0x156   :  { %v1266_v10 = vmax.f32 %v1157_v37, %v1264_v13 }
 0x158   :  { %v1268_v12 = vpack.c.bf16 %v1266_v10, %v1266_v10 }
 0x159   :  { %v1158_v14 = vpop.f32.mrf.mxu3 }
 0x15a   :  { %1410 = vmatmul.bf16.vlgmr.msrb.gmra.mxu0 %v1268_v12 }
 0x15c   :  { %v1197_v15 = vpop.f32.mrf.mxu2 }
 0x161   :  { %v1208_v18 = vpop.f32.mrf.mxu3 }
 0x162   :  { %v1209_v29 = vadd.f32 %v1208_v18, %v1196_v33 }
 0x165   :  { %v1234_v60 = vpop.f32.mrf.mxu1 }
 0x169   :  { %v1210_v22 = vpop.f32.mrf.mxu3 }
 0x16c   :  { %v1221_v21 = vpop.f32.mrf.mxu0 }
 0x16d   :  { %v1236_v24 = vpop.f32.mrf.mxu1  ;;  %v1222_v63 = vadd.f32 %v1221_v21, %v1209_v29 }
 0x16f   :  { %v1235_v30 = vadd.f32 %v1234_v60, %v1222_v63 }
 0x174   :  { %v1247_v26 = vpop.f32.mrf.mxu2  ;;  %v1223_v27 = vpop.f32.mrf.mxu0 }
 0x175   :  { %v1248_v54 = vadd.f32 %v1247_v26, %v1235_v30 }
 0x17c   :  { %v1249_v58 = vpop.f32.mrf.mxu2 }
 0x181   :  { %v1260_v31 = vpop.f32.mrf.mxu3 }
 0x182   :  { %v1261_v3 = vadd.f32 %v1260_v31, %v1248_v54 }
 0x184   :  { %v1265_v32 = vmul.f32 0.1, %v1261_v3 }
 0x186   :  { %v1267_v34 = vmax.f32 %v1261_v3, %v1265_v32 }
 0x188   :  { %v1269_v35 = vpack.c.bf16 %v1267_v34, %v1267_v34 }
 0x189   :  { %v1262_v36 = vpop.f32.mrf.mxu3 }
 0x18a   :  { %1423 = vmatmul.bf16.vlgmr.msra.gmra.mxu1 %v1269_v35 }
 0x1d7   :  { %v1411_v20 = vpop.f32.mrf.mxu0 }
 0x1d8   :  { %v1412_v47 = vadd.f32 %v2310_v46, %v1411_v20 }
 0x1df   :  { %v1413_v43 = vpop.f32.mrf.mxu0 }
 0x207   :  { %v1424_v48 = vpop.f32.mrf.mxu1 }
 0x208   :  { %v1425_v49 = vadd.f32 %v1424_v48, %v1412_v47 }
 0x20a   :  { %v1428_v50 = vmul.f32 0.1, %v1425_v49 }
 0x20c   :  { %v1429_v51 = vmax.f32 %v1425_v49, %v1428_v50 }
 0x20e   :  { %v1430_v52 = vpack.c.bf16 %v1429_v51, %v1429_v51 }
 0x20f   :  { %v1426_v53 = vpop.f32.mrf.mxu1 }
 0x210   :  { %1507 = vmatmul.bf16.vlgmr.msra.gmra.mxu2 %v1430_v52 }
 0x293   :  { %v1508_v56 = vpop.f32.mrf.mxu2 }
 0x294   :  { %v1509_v57 = vadd.f32 %v2311_v55, %v1508_v56 }
 0x296   :  { %1512 = vst [vmem:[#allocation10] sm:$0xff] %v1509_v57 }
 0x297   :  { %1523 = dma.vmem_to_hbm [thread:$0]  %s1519_s16, 128, %s1521_s19, [#allocation4]  }
 0x29b   :  { %v1510_v59 = vpop.f32.mrf.mxu2 }
 0x29c   :  { %2438 = dma.done.wait [#allocation4], 128  }
 0x29d   :  { %2439 = vsyncadd [#allocation4], 4294967168 }
 0x29e   :  { %1528 = vsyncpa [#allocation3], 1 }
 0x29f   :  { %1529 = vsyncpa [#allocation6], 1 }
 0x2a0   :  { %1530 = vsyncpa [#allocation9], 1 }
 0x2a1   :  { %1531 = vsyncpa [#allocation4], 1 }

</bundles_post_ra>
